<compile_context>
chip_gen: v6e
topology: v6e:2x2x1
jax: 0.10.0
libtpu: 0.0.40
codegen_flags: <defaults>
</compile_context>

<pallas_src>
import functools

import jax
import jax.numpy as jnp
from jax import lax
from jax.experimental import pallas as pl
from jax.experimental.pallas import tpu as pltpu


def _round_up(x, m):
    return (x + m - 1) // m * m


def _disc_kernel(x_ref, w1_ref, b1_ref, w2_ref, b2_ref, w3_ref, b3_ref, o_ref):
    """3-layer MLP + sigmoid for one batch tile; everything resident in VMEM."""
    x = x_ref[...]                                           # (tm, F), compute dtype

    # Layer 1: Linear + ReLU (f32 accumulation on the MXU).
    h1 = jnp.dot(x, w1_ref[...], preferred_element_type=jnp.float32) + b1_ref[...]
    h1 = jnp.maximum(h1, 0.0)

    # Layer 2: Linear + ReLU.
    h2 = jnp.dot(h1.astype(w2_ref.dtype), w2_ref[...],
                 preferred_element_type=jnp.float32) + b2_ref[...]
    h2 = jnp.maximum(h2, 0.0)

    # Layer 3, computed transposed so the output is a lane-dense (1, tm) row:
    #   logits_t[0, m] = sum_h w3[0, h] * h2[m, h]
    logits_t = lax.dot_general(
        w3_ref[...], h2.astype(w3_ref.dtype),
        dimension_numbers=(((1,), (1,)), ((), ())),
        preferred_element_type=jnp.float32,
    ) + b3_ref[0, 0]                                         # scalar bias from SMEM

    o_ref[...] = jax.nn.sigmoid(logits_t).astype(o_ref.dtype)


@functools.partial(jax.jit, static_argnames=("tm", "compute_dtype"))
def discriminator_forward(x, w1, b1, w2, b2, w3, b3, *, tm=1024,
                          compute_dtype=jnp.bfloat16):
    """Pallas forward pass.

    x:  (B, feat_dim)
    w1: (feat_dim, hid)   b1: (1, hid)
    w2: (hid, hid)        b2: (1, hid)
    w3: (1, hid)          b3: (1, 1)     (PyTorch-native layout for the last layer)
    returns (B, 1) float32 in (0, 1)
    """
    B, F = x.shape
    H = w1.shape[1]

    # ---- batch-tile selection ------------------------------------------------
    # Multi-tile blocks must keep the lane-dense output 128-aligned; a single tile
    # equal to the (8-padded) batch has no alignment constraint.
    tm = max(128, _round_up(int(tm), 128))
    if _round_up(B, 128) <= tm:
        tm_eff = _round_up(B, 8)                  # one grid step (small batches)
    else:
        half = _round_up(-(-B // 2), 128)         # keep >= 2 steps for v7x's 2 TCs
        tm_eff = min(tm, half) if half >= 512 else tm
    b_pad = _round_up(B, tm_eff)
    grid = (b_pad // tm_eff,)

    # ---- dtype / padding at the pallas_call boundary ---------------------------
    # bf16 halves HBM bytes for x (the dominant traffic term) and for the weights;
    # all accumulation / bias / ReLU / sigmoid math stays f32 in the kernel.
    # Callers that already store activations in compute_dtype pay no conversion.
    x_c = x.astype(compute_dtype)
    if b_pad != B:
        x_c = jnp.pad(x_c, ((0, b_pad - B), (0, 0)))
    w1_c = w1.astype(compute_dtype)
    w2_c = w2.astype(compute_dtype)
    w3_c = w3.astype(compute_dtype)
    b1_c = b1.astype(jnp.float32)
    b2_c = b2.astype(jnp.float32)
    b3_c = b3.astype(jnp.float32)

    itemsize = x_c.dtype.itemsize
    cost = pl.CostEstimate(
        flops=2 * b_pad * (F * H + H * H + H),
        transcendentals=b_pad,
        bytes_accessed=(b_pad * F * itemsize                     # x
                        + (F * H + H * H + H) * itemsize         # weights
                        + (2 * H + 1) * 4                        # biases
                        + b_pad * 4),                            # output
    )

    out = pl.pallas_call(
        _disc_kernel,
        out_shape=jax.ShapeDtypeStruct((1, b_pad), jnp.float32),
        grid_spec=pltpu.PrefetchScalarGridSpec(
            num_scalar_prefetch=0,
            grid=grid,
            in_specs=[
                pl.BlockSpec((tm_eff, F), lambda i: (i, 0)),        # x tile over batch
                # Weights / biases: constant index maps -> fetched once, VMEM-resident.
                pl.BlockSpec((F, H), lambda i: (0, 0)),             # w1
                pl.BlockSpec((1, H), lambda i: (0, 0)),             # b1
                pl.BlockSpec((H, H), lambda i: (0, 0)),             # w2
                pl.BlockSpec((1, H), lambda i: (0, 0)),             # b2
                pl.BlockSpec((1, H), lambda i: (0, 0)),             # w3 (out=1, in=H)
                pl.BlockSpec(memory_space=pltpu.MemorySpace.SMEM),  # b3 scalar
            ],
            out_specs=pl.BlockSpec((1, tm_eff), lambda i: (0, i)),  # lane-dense row
        ),
        compiler_params=pltpu.CompilerParams(
            dimension_semantics=("parallel",),
        ),
        cost_estimate=cost,
    )(x_c, w1_c, b1_c, w2_c, b2_c, w3_c, b3_c)

    return out[0, :B].reshape(B, 1)


def init_params(key, feat_dim, hid_dim):
    """Deterministic init mimicking PyTorch nn.Linear default U(-1/sqrt(fan_in), +)."""
    ks = jax.random.split(key, 6)

    def uniform(k, shape, fan_in):
        bound = 1.0 / float(fan_in) ** 0.5
        return jax.random.uniform(k, shape, jnp.float32, -bound, bound)

    w1 = uniform(ks[0], (feat_dim, hid_dim), feat_dim)   # stored (in, out) for x @ w
    b1 = uniform(ks[1], (1, hid_dim), feat_dim)
    w2 = uniform(ks[2], (hid_dim, hid_dim), hid_dim)
    b2 = uniform(ks[3], (1, hid_dim), hid_dim)
    w3 = uniform(ks[4], (1, hid_dim), hid_dim)           # PyTorch-native (out=1, in=hid)
    b3 = uniform(ks[5], (1, 1), hid_dim)
    return w1, b1, w2, b2, w3, b3


def reference_forward(x, w1, b1, w2, b2, w3, b3):
    h1 = jnp.maximum(x @ w1 + b1, 0.0)
    h2 = jnp.maximum(h1 @ w2 + b2, 0.0)
    return jax.nn.sigmoid(h2 @ w3.T + b3)


if __name__ == "__main__":
    # Small shapes consistent with the module: configs.feat_dim=32, configs.disc_hid_dim=32
    BATCH, FEAT_DIM, HID_DIM = 8, 32, 32

    key = jax.random.PRNGKey(0)
    k_x, k_p = jax.random.split(key)
    x = jax.random.normal(k_x, (BATCH, FEAT_DIM), jnp.float32)
    params = init_params(k_p, FEAT_DIM, HID_DIM)

    ref = reference_forward(x, *params)

    # Exact f32 path: validates kernel math against the pure-JAX reference.
    out_f32 = jax.block_until_ready(
        discriminator_forward(x, *params, compute_dtype=jnp.float32))
    assert out_f32.shape == (BATCH, 1)
    assert jnp.allclose(out_f32, ref, atol=1e-5, rtol=1e-5), "f32 mismatch vs reference"

    # Default fast path: bf16 inputs/weights, f32 accumulation + activations.
    out = jax.block_until_ready(discriminator_forward(x, *params))
    assert out.shape == (BATCH, 1)
    assert jnp.allclose(out, ref, atol=2e-2), "bf16 mismatch vs reference"

    print("KERNEL_OK")
</pallas_src>

<mosaic_0001>
module attributes {stable_mosaic.version = 11 : i64} {
  func.func @_disc_kernel(%arg0: i32, %arg1: memref<8x32xf32, #tpu.memory_space<vmem>>, %arg2: memref<32x32xf32, #tpu.memory_space<vmem>>, %arg3: memref<1x32xf32, #tpu.memory_space<vmem>>, %arg4: memref<32x32xf32, #tpu.memory_space<vmem>>, %arg5: memref<1x32xf32, #tpu.memory_space<vmem>>, %arg6: memref<1x32xf32, #tpu.memory_space<vmem>>, %arg7: memref<1x1xf32, #tpu.memory_space<smem>>, %arg8: memref<1x8xf32, #tpu.memory_space<vmem>>) attributes {dimension_semantics = [#tpu.dimension_semantics<parallel>], iteration_bounds = array<i64: 1>, scalar_prefetch = 0 : i64, scratch_operands = 0 : i64, tpu.core_type = #tpu.core_type<tc>, window_params = [{transform_indices = @transform_0, window_bounds = array<i64: 8, 32>}, {pipeline_mode = #tpu.pipeline_mode<synchronous>, transform_indices = @transform_1, window_bounds = array<i64: 32, 32>}, {pipeline_mode = #tpu.pipeline_mode<synchronous>, transform_indices = @transform_2, window_bounds = array<i64: 1, 32>}, {pipeline_mode = #tpu.pipeline_mode<synchronous>, transform_indices = @transform_3, window_bounds = array<i64: 32, 32>}, {pipeline_mode = #tpu.pipeline_mode<synchronous>, transform_indices = @transform_4, window_bounds = array<i64: 1, 32>}, {pipeline_mode = #tpu.pipeline_mode<synchronous>, transform_indices = @transform_5, window_bounds = array<i64: 1, 32>}, {transform_indices = @transform_6, window_bounds = array<i64: 1, 1>}, {transform_indices = @transform_7, window_bounds = array<i64: 1, 8>}]} {
    %c0 = arith.constant 0 : index
    %c0_0 = arith.constant 0 : index
    %0 = vector.load %arg1[%c0, %c0_0] : memref<8x32xf32, #tpu.memory_space<vmem>>, vector<8x32xf32>
    %c0_1 = arith.constant 0 : index
    %c0_2 = arith.constant 0 : index
    %1 = vector.load %arg2[%c0_1, %c0_2] : memref<32x32xf32, #tpu.memory_space<vmem>>, vector<32x32xf32>
    %cst = arith.constant dense<0.000000e+00> : vector<8x32xf32>
    %2 = tpu.matmul %0, %1, %cst {dimension_numbers = #tpu.dot_dimension_numbers<[1], [0], [0], [1], [0, 0, 1, 1], [], []>} : vector<8x32xf32>, vector<32x32xf32>, vector<8x32xf32> -> vector<8x32xf32>
    %c0_3 = arith.constant 0 : index
    %c0_4 = arith.constant 0 : index
    %3 = vector.load %arg3[%c0_3, %c0_4] : memref<1x32xf32, #tpu.memory_space<vmem>>, vector<1x32xf32>
    %4 = vector.broadcast %3 : vector<1x32xf32> to vector<8x32xf32>
    %5 = arith.addf %2, %4 : vector<8x32xf32>
    %cst_5 = arith.constant 0.000000e+00 : f32
    %6 = vector.broadcast %cst_5 : f32 to vector<8x32xf32>
    %7 = arith.maximumf %5, %6 : vector<8x32xf32>
    %c0_6 = arith.constant 0 : index
    %c0_7 = arith.constant 0 : index
    %8 = vector.load %arg4[%c0_6, %c0_7] : memref<32x32xf32, #tpu.memory_space<vmem>>, vector<32x32xf32>
    %cst_8 = arith.constant dense<0.000000e+00> : vector<8x32xf32>
    %9 = tpu.matmul %7, %8, %cst_8 {dimension_numbers = #tpu.dot_dimension_numbers<[1], [0], [0], [1], [0, 0, 1, 1], [], []>} : vector<8x32xf32>, vector<32x32xf32>, vector<8x32xf32> -> vector<8x32xf32>
    %c0_9 = arith.constant 0 : index
    %c0_10 = arith.constant 0 : index
    %10 = vector.load %arg5[%c0_9, %c0_10] : memref<1x32xf32, #tpu.memory_space<vmem>>, vector<1x32xf32>
    %11 = vector.broadcast %10 : vector<1x32xf32> to vector<8x32xf32>
    %12 = arith.addf %9, %11 : vector<8x32xf32>
    %cst_11 = arith.constant 0.000000e+00 : f32
    %13 = vector.broadcast %cst_11 : f32 to vector<8x32xf32>
    %14 = arith.maximumf %12, %13 : vector<8x32xf32>
    %c0_12 = arith.constant 0 : index
    %c0_13 = arith.constant 0 : index
    %15 = vector.load %arg6[%c0_12, %c0_13] : memref<1x32xf32, #tpu.memory_space<vmem>>, vector<1x32xf32>
    %cst_14 = arith.constant dense<0.000000e+00> : vector<1x8xf32>
    %16 = tpu.matmul %15, %14, %cst_14 {dimension_numbers = #tpu.dot_dimension_numbers<[1], [1], [0], [0], [0, 0, 1, 0], [], []>} : vector<1x32xf32>, vector<8x32xf32>, vector<1x8xf32> -> vector<1x8xf32>
    %c0_15 = arith.constant 0 : index
    %c0_16 = arith.constant 0 : index
    %17 = memref.load %arg7[%c0_15, %c0_16] : memref<1x1xf32, #tpu.memory_space<smem>>
    %18 = vector.broadcast %17 : f32 to vector<1x8xf32>
    %19 = arith.addf %16, %18 : vector<1x8xf32>
    %20 = arith.negf %19 : vector<1x8xf32>
    %21 = math.exp %20 : vector<1x8xf32>
    %cst_17 = arith.constant 1.000000e+00 : f32
    %22 = vector.broadcast %cst_17 : f32 to vector<1x8xf32>
    %23 = arith.addf %22, %21 : vector<1x8xf32>
    %24 = arith.divf %22, %23 : vector<1x8xf32>
    %c0_18 = arith.constant 0 : index
    %c0_19 = arith.constant 0 : index
    %25 = vector.load %arg8[%c0_18, %c0_19] : memref<1x8xf32, #tpu.memory_space<vmem>>, vector<1x8xf32>
    tpu.vector_store %arg8[%c0_18, %c0_19], %24 {strides = array<i32>} : memref<1x8xf32, #tpu.memory_space<vmem>>, vector<1x8xf32>,
    return
  }
  func.func @transform_0(%arg0: i32) -> (i32, i32) {
    %c0_i32 = arith.constant 0 : i32
    %c0_i32_0 = arith.constant 0 : i32
    return %arg0, %c0_i32 : i32, i32
  }
  func.func @transform_1(%arg0: i32) -> (i32, i32) {
    %c0_i32 = arith.constant 0 : i32
    %c0_i32_0 = arith.constant 0 : i32
    %c0_i32_1 = arith.constant 0 : i32
    return %c0_i32, %c0_i32_0 : i32, i32
  }
  func.func @transform_2(%arg0: i32) -> (i32, i32) {
    %c0_i32 = arith.constant 0 : i32
    %c0_i32_0 = arith.constant 0 : i32
    %c0_i32_1 = arith.constant 0 : i32
    return %c0_i32, %c0_i32_0 : i32, i32
  }
  func.func @transform_3(%arg0: i32) -> (i32, i32) {
    %c0_i32 = arith.constant 0 : i32
    %c0_i32_0 = arith.constant 0 : i32
    %c0_i32_1 = arith.constant 0 : i32
    return %c0_i32, %c0_i32_0 : i32, i32
  }
  func.func @transform_4(%arg0: i32) -> (i32, i32) {
    %c0_i32 = arith.constant 0 : i32
    %c0_i32_0 = arith.constant 0 : i32
    %c0_i32_1 = arith.constant 0 : i32
    return %c0_i32, %c0_i32_0 : i32, i32
  }
  func.func @transform_5(%arg0: i32) -> (i32, i32) {
    %c0_i32 = arith.constant 0 : i32
    %c0_i32_0 = arith.constant 0 : i32
    %c0_i32_1 = arith.constant 0 : i32
    return %c0_i32, %c0_i32_0 : i32, i32
  }
  func.func @transform_6(%arg0: i32) -> (i32, i32) {
    %c0_i32 = arith.constant 0 : i32
    %c0_i32_0 = arith.constant 0 : i32
    %c0_i32_1 = arith.constant 0 : i32
    return %c0_i32, %c0_i32_0 : i32, i32
  }
  func.func @transform_7(%arg0: i32) -> (i32, i32) {
    %c0_i32 = arith.constant 0 : i32
    %c0_i32_0 = arith.constant 0 : i32
    return %c0_i32, %arg0 : i32, i32
  }
}

</mosaic_0001>

<bundles_post_ra>
// kernel: discriminator_forward.1
= control target key start
LH: loop header
LB: loop body
LE: loop exit
PB: predicated region body
PF: predicated region fallthrough
CT: control target
= control target key end

     0   :  { %13 = vsyncpa [#allocation4], 0  ;;  %s565_s0 = inlined_call_operand.hbm [shape: f32[8,32], index: 0, kind: input, shape index: {}]   ;;  %s566_s1 = inlined_call_operand.hbm [shape: f32[32,32], index: 1, kind: input, shape index: {}]   ;;  %s567_s2 = inlined_call_operand.vmem [shape: f32[1,32], index: 2, kind: input, shape index: {}]   ;;  %s568_s3 = inlined_call_operand.hbm [shape: f32[32,32], index: 3, kind: input, shape index: {}]   ;;  %s569_s4 = inlined_call_operand.vmem [shape: f32[1,32], index: 4, kind: input, shape index: {}]   ;;  %s570_s5 = inlined_call_operand.vmem [shape: f32[1,32], index: 5, kind: input, shape index: {}]   ;;  %s571_s6 = inlined_call_operand.<no memory space> [shape: f32[1,1], index: 6, kind: input, shape index: {}]   ;;  %s572_s7 = inlined_call_operand.hbm [shape: f32[1,8], index: 7, kind: output, shape index: {}]  }
   0x1   :  { %14 = vsyncpa [#allocation7], 0 }
   0x2   :  { %15 = vsyncpa [#allocation5], 0  ;;  %s486_s24 = smov [#allocation6]  }
   0x3   :  { %s31_s25 = sshll.u32 %s486_s24, 4  ;;  %s32_s25 = int_to_ptr.vmem [resolvable:$true] %s31_s25 }
   0x4   :  { %s408_s26 = scalar_lea.vmem %s32_s25, 512  ;;  %p413_p1 = scmp.lt.s32.totalorder %s32_s25, %s32_s25 }
   0x5   :  { %p409_p0 = scmp.ne.s32.totalorder %s32_s25, %s408_s26  ;;  %p414_p2 = scmp.lt.s32.totalorder %s408_s26, %s408_s26 }
   0x7   :  { %p415_p3 = por %p414_p2, %p413_p1 }
   0x9   :  { %p416_p4 = pnand %p415_p3, %p409_p0 }
   0xb   :  { %419 = shalt.err (!%p416_p4)
}
   0xc   :  { %s487_s27 = smov 128   ;;  %s488_s28 = smov 8  }
   0xd   :  { %37 = dma.hbm_to_vmem [thread:$0]  %s566_s1, 512, %s32_s25, [#allocation7], %s487_s27, %s487_s27, %s488_s28  }
   0xe   :  { %s489_s8 = smov [#allocation3]   ;;  %s490_s10 = smov [#allocation8]  }
   0xf   :  { %s22_s9 = sshll.u32 %s489_s8, 4  ;;  %s45_s11 = sshll.u32 %s490_s10, 4  ;;  %s23_s9 = int_to_ptr.vmem [resolvable:$true] %s22_s9  ;;  %s46_s11 = int_to_ptr.vmem [resolvable:$true] %s45_s11 }
  0x10   :  { %s428_s12 = scalar_lea.vmem %s23_s9, 128  ;;  %p433_p6 = scmp.lt.s32.totalorder %s23_s9, %s23_s9 }
  0x11   :  { %p429_p5 = scmp.ne.s32.totalorder %s23_s9, %s428_s12  ;;  %p434_p7 = scmp.lt.s32.totalorder %s428_s12, %s428_s12 }
  0x13   :  { %p435_p8 = por %p434_p7, %p433_p6 }
  0x15   :  { %p436_p9 = pnand %p435_p8, %p429_p5 }
  0x17   :  { %439 = shalt.err (!%p436_p9)
}
  0x18   :  { %25 = dma.hbm_to_vmem [thread:$0]  %s565_s0, 128, %s23_s9, [#allocation4]  }
  0x19   :  { %s448_s15 = scalar_lea.vmem %s46_s11, 512  ;;  %p453_p11 = scmp.lt.s32.totalorder %s46_s11, %s46_s11 }
  0x1a   :  { %p449_p10 = scmp.ne.s32.totalorder %s46_s11, %s448_s15  ;;  %p454_p12 = scmp.lt.s32.totalorder %s448_s15, %s448_s15 }
  0x1c   :  { %p455_p13 = por %p454_p12, %p453_p11 }
  0x1e   :  { %p456_p0 = pnand %p455_p13, %p449_p10 }
  0x20   :  { %459 = shalt.err (!%p456_p0)
}
  0x21   :  { %51 = dma.hbm_to_vmem [thread:$0]  %s568_s3, 512, %s46_s11, [#allocation7], %s487_s27, %s487_s27, %s488_s28  }
  0x22   :  { %480 = dma.done.wait [#allocation4], 128  }
  0x23   :  { %481 = vsyncadd [#allocation4], 4294967168 }
  0x24   :  { %482 = dma.done.wait [#allocation7], 1024  }
  0x25   :  { %483 = vsyncadd [#allocation7], 4294966272  ;;  %v491_v0 = vmov 0.0   ;;  %vm492_vm0 = vmmov 0   ;;  %v71_v1 = vld [vmem:[#allocation6 + $0x18] sm:$0xff]  ;;  %v70_v2 = vld [vmem:[#allocation6 + $0x10] sm:$0xff]  ;;  %v241_v21 = vstv %s571_s6 }
  0x26   :  { %361 = vmatprep.subr.mxu0 %v491_v0  ;;  %369 = vmatprep.mubr.msk.f32.mxu0 %vm492_vm0, %v491_v0  ;;  %v157_v3 = vld [vmem:[#allocation8 + $0x18] sm:$0xff]  ;;  %v69_v4 = vld [vmem:[#allocation6 + $0x8] sm:$0xff]  ;;  %v68_v5 = vld [vmem:[#allocation6] sm:$0xff]  ;;  %vm79_vm1 = vcmask 261120   ;;  %vm324_vm2 = vcmask 57344  }
  0x27   :  { %372 = vmatprep.subr.mxu1 %v491_v0  ;;  %380 = vmatprep.mubr.msk.f32.mxu1 %vm492_vm0, %v491_v0  ;;  %v67_v6 = vld [vmem:[#allocation3] sm:$0xff]  ;;  %v156_v7 = vld [vmem:[#allocation8 + $0x10] sm:$0xff]  ;;  %v155_v8 = vld [vmem:[#allocation8 + $0x8] sm:$0xff] }
  0x28   :  { %362 = vmatpush3.msra.mxu0 %v71_v1  ;;  %373 = vmatpush3.msra.mxu1 %v157_v3  ;;  %v154_v9 = vld [vmem:[#allocation8] sm:$0xff]  ;;  %v342_v10 = vld [vmem:[%s567_s2] ss:$0 sm:$0xff] }
  0x29   :  { %363 = vmatprep.subr.mxu0 %v491_v0  ;;  %374 = vmatprep.subr.mxu1 %v491_v0  ;;  %v344_v15 = vld [vmem:[%s569_s4] ss:$0 sm:$0xff]  ;;  %s493_s4 = smov [#allocation9]  }
  0x2a   :  { %364 = vmatpush3.msra.mxu0 %v70_v2  ;;  %375 = vmatpush3.msra.mxu1 %v156_v7  ;;  %v239_v20 = vld [vmem:[%s570_s5] sm:$0x1]  ;;  %s332_s22 = sshll.u32 %s493_s4, 4  ;;  %s333_s22 = int_to_ptr.vmem [resolvable:$true] %s332_s22 }
  0x2b   :  { %365 = vmatprep.subr.mxu0 %v491_v0  ;;  %376 = vmatprep.subr.mxu1 %v491_v0  ;;  %s460_s5 = scalar_lea.vmem %s333_s22, 16  ;;  %s464_s23 = scalar_lea.vmem %s333_s22, 32 }
  0x2c   :  { %366 = vmatpush3.msra.mxu0 %v69_v4  ;;  %377 = vmatpush3.msra.mxu1 %v155_v8  ;;  %p461_p1 = scmp.ne.s32.totalorder %s333_s22, %s460_s5  ;;  %p465_p2 = scmp.lt.s32.totalorder %s333_s22, %s333_s22 }
  0x2d   :  { %367 = vmatprep.subr.mxu0 %v491_v0  ;;  %378 = vmatprep.subr.mxu1 %v491_v0  ;;  %p466_p3 = scmp.lt.s32.totalorder %s464_s23, %s460_s5 }
  0x2e   :  { %368 = vmatpush3.msra.mxu0 %v68_v5  ;;  %379 = vmatpush3.msra.mxu1 %v154_v9 }
  0x2f   :  { %370 = vmatmul.mubr.msk.f32.vlgmr.msra.gmra.mxu0 %vm79_vm1, %v67_v6  ;;  %383 = vmatprep.subr.mxu0 %v491_v0  ;;  %p467_p4 = por %p466_p3, %p465_p2 }
  0x30   :  { %385 = vmatprep.mubr.msk.f32.mxu0 %vm492_vm0, %v491_v0 }
  0x31   :  { %p468_p5 = pnand %p467_p4, %p461_p1 }
  0xef   :  { %v149_v11 = vpop.f32.mrf.mxu0 }
  0xf0   :  { %v150_v12 = vadd.f32 %v342_v10, %v149_v11 }
  0xf1   :  { %v371_v13 = vpop.f32.mrf.mxu0 }
  0xf2   :  { %v153_v14 = vmax.f32 %v150_v12, 0.0 }
  0xf4   :  { %381 = vmatmul.mubr.msk.f32.vlgmr.msra.gmra.mxu1 %vm79_vm1, %v153_v14 }
 0x1b4   :  { %v234_v16 = vpop.f32.mrf.mxu1 }
 0x1b5   :  { %v235_v17 = vadd.f32 %v344_v15, %v234_v16 }
 0x1b6   :  { %v382_v18 = vpop.f32.mrf.mxu1 }
 0x1b7   :  { %v238_v19 = vmax.f32 %v235_v17, 0.0 }
 0x1b9   :  { %384 = vmatpush3.xpose.msk.msra.mxu0 %vm79_vm1, %v238_v19 }
 0x1bc   :  { %386 = vmatmul.mubr.msk.f32.vlgmr.msra.gmra.mxu0 %vm79_vm1, %v239_v20 }
 0x27c   :  { %v314_v22 = vpop.f32.mrf.mxu0 }
 0x27d   :  { %v315_v23 = vadd.f32 %v314_v22, %v241_v21 }
 0x27e   :  { %v387_v24 = vpop.f32.mrf.mxu0 }
 0x27f   :  { %v348_v25 = vmul.f32 -1.442695, %v315_v23 }
 0x281   :  { %396 = vpow2.f32 %v348_v25 }
 0x28e   :  { %v397_v26 = vpop.eup %396 }
 0x28f   :  { %v321_v27 = vadd.f32 1.0, %v397_v26 }
 0x291   :  { %398 = vrcp.f32 %v321_v27 }
 0x29e   :  { %v399_v28 = vpop.eup %398 }
 0x29f   :  { %325 = vst.msk [vmem:[#allocation9] sm:$0x1] %vm324_vm2, %v399_v28 }
 0x2a0   :  { %471 = shalt.err (!%p468_p5)
}
 0x2a1   :  { %335 = dma.vmem_to_hbm [thread:$0]  %s333_s22, 16, %s572_s7, [#allocation5]  }
 0x2a2   :  { %484 = dma.done.wait [#allocation5], 16  }
 0x2a3   :  { %485 = vsyncadd [#allocation5], 4294967280 }
 0x2a4   :  { %339 = vsyncpa [#allocation4], 1 }
 0x2a5   :  { %340 = vsyncpa [#allocation7], 1 }
 0x2a6   :  { %341 = vsyncpa [#allocation5], 1 }

</bundles_post_ra>
